<compile_context>
chip_gen: v6e
topology: v6e:2x2x1
jax: 0.10.0
libtpu: 0.0.40
codegen_flags: <defaults>
</compile_context>

<pallas_src>
import jax
import jax.numpy as jnp
from jax.experimental import pallas as pl
from jax.experimental.pallas import tpu as pltpu


def _autoencoder_kernel(x_ref,
                        w1_ref, b1_ref,
                        w2_ref, b2_ref,
                        w3_ref, b3_ref,
                        w4_ref, b4_ref,
                        out_ref):
    """Fused autoencoder forward for one (features, batch_tile) slab.

    Activations are (features, batch_tile): batch on the lane axis.
    Weights are (out_features, in_features); biases are (out_features, 1) f32.
    """
    dt = w1_ref.dtype                          # MXU operand dtype (f32 or bf16)
    x = x_ref[...].astype(dt)                  # no-op when dtypes already match

    # ---- encoder: Linear(D0,D1) -> ReLU -> Linear(D1,D2) ----
    h = jnp.dot(w1_ref[...], x, preferred_element_type=jnp.float32)
    h = jnp.maximum(h + b1_ref[...], 0.0)                       # f32 epilogue
    z = jnp.dot(w2_ref[...], h.astype(dt), preferred_element_type=jnp.float32)
    z = z + b2_ref[...]

    # ---- decoder: Linear(D2,D1) -> ReLU -> Linear(D1,D0) ----
    h = jnp.dot(w3_ref[...], z.astype(dt), preferred_element_type=jnp.float32)
    h = jnp.maximum(h + b3_ref[...], 0.0)
    y = jnp.dot(w4_ref[...], h.astype(dt), preferred_element_type=jnp.float32)
    y = y + b4_ref[...]

    out_ref[...] = y.astype(out_ref.dtype)


def _pick_batch_tile(B):
    """Fixed, lane-aligned batch tile with >=2 grid steps whenever possible.

    >=2 steps enables DMA/compute pipelining and lets the 'parallel' batch axis
    shard across the two v7x TensorCores; the 1024 cap keeps double-buffered
    tiles tiny relative to every generation's VMEM.
    """
    for t in (1024, 512, 256, 128):
        if B % t == 0 and B // t >= 2:
            return t
    return B   # tiny batch: one full-array block (full-dim rule allows it)


def linear_autoencoder_forward_t(x_t, params, *, batch_tile=None):
    """Transposed-layout forward.  x_t: (D0, B) -> (D0, B)."""
    D0, B = x_t.shape
    if batch_tile is None:
        batch_tile = _pick_batch_tile(B)
    assert B % batch_tile == 0
    if batch_tile < B:
        # Batch is the lane axis -> tiles must satisfy the (8,128) rule.
        assert batch_tile % 128 == 0, "batch_tile must be a multiple of 128"

    (w1, b1), (w2, b2), (w3, b3), (w4, b4) = params
    D1, D2 = w1.shape[0], w2.shape[0]
    assert w1.shape == (D1, D0) and w2.shape == (D2, D1)
    assert w3.shape == (D1, D2) and w4.shape == (D0, D1)

    # Biases as (out, 1) f32 columns: broadcast over the lane (batch) axis and
    # keep the bias/ReLU epilogue in f32 regardless of the matmul dtype.
    b1c = b1.reshape(-1, 1).astype(jnp.float32)
    b2c = b2.reshape(-1, 1).astype(jnp.float32)
    b3c = b3.reshape(-1, 1).astype(jnp.float32)
    b4c = b4.reshape(-1, 1).astype(jnp.float32)

    grid = (B // batch_tile,)

    def whole(a):
        # Whole-array block, same block every grid step (DMA'd once).  Weights +
        # biases total well under 100 KiB here, so the default double-buffering
        # of these constant blocks is negligible and we skip pl.Buffered(1).
        return pl.BlockSpec(a.shape, lambda i, _nd=a.ndim: (0,) * _nd)

    itemsize = int(x_t.dtype.itemsize)
    param_bytes = sum(int(w.size) * int(w.dtype.itemsize)
                      + int(b.size) * int(b.dtype.itemsize)
                      for w, b in params)
    cost = pl.CostEstimate(
        flops=4 * B * (D0 * D1 + D1 * D2),      # 4 matmuls, 2 flop/MAC
        transcendentals=0,
        bytes_accessed=2 * B * D0 * itemsize + param_bytes)

    # VMEM audit: double-buffered x/out tiles dominate; keep them far below the
    # smallest scoped-VMEM default (16 MiB on v5e; 64 MiB physical on v7x), so
    # no vmem_limit_bytes override is needed.
    assert 2 * 2 * D0 * batch_tile * itemsize < 8 * 1024 * 1024

    return pl.pallas_call(
        _autoencoder_kernel,
        out_shape=jax.ShapeDtypeStruct((D0, B), x_t.dtype),
        grid_spec=pltpu.PrefetchScalarGridSpec(
            num_scalar_prefetch=0,
            grid=grid,
            in_specs=[
                pl.BlockSpec((D0, batch_tile), lambda i: (0, i)),   # x_t tile
                whole(w1), whole(b1c),
                whole(w2), whole(b2c),
                whole(w3), whole(b3c),
                whole(w4), whole(b4c),
            ],
            out_specs=pl.BlockSpec((D0, batch_tile), lambda i: (0, i)),
        ),
        compiler_params=pltpu.CompilerParams(
            dimension_semantics=("parallel",)),
        cost_estimate=cost,
    )(x_t, w1, b1c, w2, b2c, w3, b3c, w4, b4c)


def linear_autoencoder_forward(x, params, *, batch_tile=None):
    """PyTorch-interface forward: x (B, D0) -> (B, D0).

    The transposes are layout plumbing so the kernel sees batch on the lane
    axis; callers that already keep (features, batch) data should call
    linear_autoencoder_forward_t directly and skip them.
    """
    return linear_autoencoder_forward_t(x.T, params, batch_tile=batch_tile).T


def init_linear(key, fan_in, fan_out):
    """PyTorch-style kaiming-uniform init.  W: (out, in) (nn.Linear layout)."""
    kw, kb = jax.random.split(key)
    bound = 1.0 / jnp.sqrt(fan_in)
    w = jax.random.uniform(kw, (fan_out, fan_in), jnp.float32, -bound, bound)
    b = jax.random.uniform(kb, (fan_out,), jnp.float32, -bound, bound)
    return w, b


def reference_forward(x, params):
    (w1, b1), (w2, b2), (w3, b3), (w4, b4) = params
    h = jnp.maximum(x @ w1.T + b1, 0.0)
    z = h @ w2.T + b2
    h = jnp.maximum(z @ w3.T + b3, 0.0)
    return h @ w4.T + b4


if __name__ == "__main__":
    # Linear_Autoencoder(layers_param_count=[64, 32, 16], activation=nn.ReLU)
    layers_param_count = [64, 32, 16]
    D0, D1, D2 = layers_param_count
    B = 256                      # small, but enough for a (2,)-step pipelined grid

    key = jax.random.PRNGKey(0)
    k_x, k1, k2, k3, k4 = jax.random.split(key, 5)

    x = jax.random.normal(k_x, (B, D0), jnp.float32)

    params = [
        init_linear(k1, D0, D1),   # encoder Linear(D0, D1)
        init_linear(k2, D1, D2),   # encoder Linear(D1, D2)
        init_linear(k3, D2, D1),   # decoder Linear(D2, D1)
        init_linear(k4, D1, D0),   # decoder Linear(D1, D0)
    ]

    # ---- f32 path: exact check against the reference ----
    y = jax.block_until_ready(linear_autoencoder_forward(x, params))
    y_ref = reference_forward(x, params)
    assert y.shape == (B, D0)
    assert jnp.allclose(y, y_ref, atol=1e-5, rtol=1e-5)

    # ---- bf16-I/O path: halves HBM traffic in this memory-bound kernel ----
    params_bf16 = [(w.astype(jnp.bfloat16), b) for w, b in params]
    x_bf16 = x.astype(jnp.bfloat16)
    y16 = jax.block_until_ready(linear_autoencoder_forward(x_bf16, params_bf16))
    assert y16.dtype == jnp.bfloat16
    assert jnp.allclose(y16.astype(jnp.float32), y_ref, atol=1e-1, rtol=1e-1)

    print("KERNEL_OK")
</pallas_src>

<mosaic_0001>
module attributes {stable_mosaic.version = 11 : i64} {
  func.func @_autoencoder_kernel(%arg0: i32, %arg1: memref<64x128xf32, #tpu.memory_space<vmem>>, %arg2: memref<32x64xf32, #tpu.memory_space<vmem>>, %arg3: memref<32x1xf32, #tpu.memory_space<vmem>>, %arg4: memref<16x32xf32, #tpu.memory_space<vmem>>, %arg5: memref<16x1xf32, #tpu.memory_space<vmem>>, %arg6: memref<32x16xf32, #tpu.memory_space<vmem>>, %arg7: memref<32x1xf32, #tpu.memory_space<vmem>>, %arg8: memref<64x32xf32, #tpu.memory_space<vmem>>, %arg9: memref<64x1xf32, #tpu.memory_space<vmem>>, %arg10: memref<64x128xf32, #tpu.memory_space<vmem>>) attributes {dimension_semantics = [#tpu.dimension_semantics<parallel>], iteration_bounds = array<i64: 2>, scalar_prefetch = 0 : i64, scratch_operands = 0 : i64, tpu.core_type = #tpu.core_type<tc>, window_params = [{transform_indices = @transform_0, window_bounds = array<i64: 64, 128>}, {pipeline_mode = #tpu.pipeline_mode<synchronous>, transform_indices = @transform_1, window_bounds = array<i64: 32, 64>}, {pipeline_mode = #tpu.pipeline_mode<synchronous>, transform_indices = @transform_2, window_bounds = array<i64: 32, 1>}, {pipeline_mode = #tpu.pipeline_mode<synchronous>, transform_indices = @transform_3, window_bounds = array<i64: 16, 32>}, {pipeline_mode = #tpu.pipeline_mode<synchronous>, transform_indices = @transform_4, window_bounds = array<i64: 16, 1>}, {pipeline_mode = #tpu.pipeline_mode<synchronous>, transform_indices = @transform_5, window_bounds = array<i64: 32, 16>}, {pipeline_mode = #tpu.pipeline_mode<synchronous>, transform_indices = @transform_6, window_bounds = array<i64: 32, 1>}, {pipeline_mode = #tpu.pipeline_mode<synchronous>, transform_indices = @transform_7, window_bounds = array<i64: 64, 32>}, {pipeline_mode = #tpu.pipeline_mode<synchronous>, transform_indices = @transform_8, window_bounds = array<i64: 64, 1>}, {transform_indices = @transform_9, window_bounds = array<i64: 64, 128>}]} {
    %c0 = arith.constant 0 : index
    %c0_0 = arith.constant 0 : index
    %0 = vector.load %arg1[%c0, %c0_0] : memref<64x128xf32, #tpu.memory_space<vmem>>, vector<64x128xf32>
    %c0_1 = arith.constant 0 : index
    %c0_2 = arith.constant 0 : index
    %1 = vector.load %arg2[%c0_1, %c0_2] : memref<32x64xf32, #tpu.memory_space<vmem>>, vector<32x64xf32>
    %cst = arith.constant dense<0.000000e+00> : vector<32x128xf32>
    %2 = tpu.matmul %1, %0, %cst {dimension_numbers = #tpu.dot_dimension_numbers<[1], [0], [0], [1], [0, 0, 1, 1], [], []>} : vector<32x64xf32>, vector<64x128xf32>, vector<32x128xf32> -> vector<32x128xf32>
    %c0_3 = arith.constant 0 : index
    %c0_4 = arith.constant 0 : index
    %3 = vector.load %arg3[%c0_3, %c0_4] : memref<32x1xf32, #tpu.memory_space<vmem>>, vector<32x1xf32>
    %4 = vector.broadcast %3 : vector<32x1xf32> to vector<32x128xf32>
    %5 = arith.addf %2, %4 : vector<32x128xf32>
    %cst_5 = arith.constant 0.000000e+00 : f32
    %6 = vector.broadcast %cst_5 : f32 to vector<32x128xf32>
    %7 = arith.maximumf %5, %6 : vector<32x128xf32>
    %c0_6 = arith.constant 0 : index
    %c0_7 = arith.constant 0 : index
    %8 = vector.load %arg4[%c0_6, %c0_7] : memref<16x32xf32, #tpu.memory_space<vmem>>, vector<16x32xf32>
    %cst_8 = arith.constant dense<0.000000e+00> : vector<16x128xf32>
    %9 = tpu.matmul %8, %7, %cst_8 {dimension_numbers = #tpu.dot_dimension_numbers<[1], [0], [0], [1], [0, 0, 1, 1], [], []>} : vector<16x32xf32>, vector<32x128xf32>, vector<16x128xf32> -> vector<16x128xf32>
    %c0_9 = arith.constant 0 : index
    %c0_10 = arith.constant 0 : index
    %10 = vector.load %arg5[%c0_9, %c0_10] : memref<16x1xf32, #tpu.memory_space<vmem>>, vector<16x1xf32>
    %11 = vector.broadcast %10 : vector<16x1xf32> to vector<16x128xf32>
    %12 = arith.addf %9, %11 : vector<16x128xf32>
    %c0_11 = arith.constant 0 : index
    %c0_12 = arith.constant 0 : index
    %13 = vector.load %arg6[%c0_11, %c0_12] : memref<32x16xf32, #tpu.memory_space<vmem>>, vector<32x16xf32>
    %cst_13 = arith.constant dense<0.000000e+00> : vector<32x128xf32>
    %14 = tpu.matmul %13, %12, %cst_13 {dimension_numbers = #tpu.dot_dimension_numbers<[1], [0], [0], [1], [0, 0, 1, 1], [], []>} : vector<32x16xf32>, vector<16x128xf32>, vector<32x128xf32> -> vector<32x128xf32>
    %c0_14 = arith.constant 0 : index
    %c0_15 = arith.constant 0 : index
    %15 = vector.load %arg7[%c0_14, %c0_15] : memref<32x1xf32, #tpu.memory_space<vmem>>, vector<32x1xf32>
    %16 = vector.broadcast %15 : vector<32x1xf32> to vector<32x128xf32>
    %17 = arith.addf %14, %16 : vector<32x128xf32>
    %cst_16 = arith.constant 0.000000e+00 : f32
    %18 = vector.broadcast %cst_16 : f32 to vector<32x128xf32>
    %19 = arith.maximumf %17, %18 : vector<32x128xf32>
    %c0_17 = arith.constant 0 : index
    %c0_18 = arith.constant 0 : index
    %20 = vector.load %arg8[%c0_17, %c0_18] : memref<64x32xf32, #tpu.memory_space<vmem>>, vector<64x32xf32>
    %cst_19 = arith.constant dense<0.000000e+00> : vector<64x128xf32>
    %21 = tpu.matmul %20, %19, %cst_19 {dimension_numbers = #tpu.dot_dimension_numbers<[1], [0], [0], [1], [0, 0, 1, 1], [], []>} : vector<64x32xf32>, vector<32x128xf32>, vector<64x128xf32> -> vector<64x128xf32>
    %c0_20 = arith.constant 0 : index
    %c0_21 = arith.constant 0 : index
    %22 = vector.load %arg9[%c0_20, %c0_21] : memref<64x1xf32, #tpu.memory_space<vmem>>, vector<64x1xf32>
    %23 = vector.broadcast %22 : vector<64x1xf32> to vector<64x128xf32>
    %24 = arith.addf %21, %23 : vector<64x128xf32>
    %c0_22 = arith.constant 0 : index
    %c0_23 = arith.constant 0 : index
    %25 = vector.load %arg10[%c0_22, %c0_23] : memref<64x128xf32, #tpu.memory_space<vmem>>, vector<64x128xf32>
    tpu.vector_store %arg10[%c0_22, %c0_23], %24 {strides = array<i32>} : memref<64x128xf32, #tpu.memory_space<vmem>>, vector<64x128xf32>,
    return
  }
  func.func @transform_0(%arg0: i32) -> (i32, i32) {
    %c0_i32 = arith.constant 0 : i32
    %c0_i32_0 = arith.constant 0 : i32
    return %c0_i32, %arg0 : i32, i32
  }
  func.func @transform_1(%arg0: i32) -> (i32, i32) {
    %c0_i32 = arith.constant 0 : i32
    %c0_i32_0 = arith.constant 0 : i32
    %c0_i32_1 = arith.constant 0 : i32
    return %c0_i32, %c0_i32_0 : i32, i32
  }
  func.func @transform_2(%arg0: i32) -> (i32, i32) {
    %c0_i32 = arith.constant 0 : i32
    %c0_i32_0 = arith.constant 0 : i32
    %c0_i32_1 = arith.constant 0 : i32
    return %c0_i32, %c0_i32_0 : i32, i32
  }
  func.func @transform_3(%arg0: i32) -> (i32, i32) {
    %c0_i32 = arith.constant 0 : i32
    %c0_i32_0 = arith.constant 0 : i32
    %c0_i32_1 = arith.constant 0 : i32
    return %c0_i32, %c0_i32_0 : i32, i32
  }
  func.func @transform_4(%arg0: i32) -> (i32, i32) {
    %c0_i32 = arith.constant 0 : i32
    %c0_i32_0 = arith.constant 0 : i32
    %c0_i32_1 = arith.constant 0 : i32
    return %c0_i32, %c0_i32_0 : i32, i32
  }
  func.func @transform_5(%arg0: i32) -> (i32, i32) {
    %c0_i32 = arith.constant 0 : i32
    %c0_i32_0 = arith.constant 0 : i32
    %c0_i32_1 = arith.constant 0 : i32
    return %c0_i32, %c0_i32_0 : i32, i32
  }
  func.func @transform_6(%arg0: i32) -> (i32, i32) {
    %c0_i32 = arith.constant 0 : i32
    %c0_i32_0 = arith.constant 0 : i32
    %c0_i32_1 = arith.constant 0 : i32
    return %c0_i32, %c0_i32_0 : i32, i32
  }
  func.func @transform_7(%arg0: i32) -> (i32, i32) {
    %c0_i32 = arith.constant 0 : i32
    %c0_i32_0 = arith.constant 0 : i32
    %c0_i32_1 = arith.constant 0 : i32
    return %c0_i32, %c0_i32_0 : i32, i32
  }
  func.func @transform_8(%arg0: i32) -> (i32, i32) {
    %c0_i32 = arith.constant 0 : i32
    %c0_i32_0 = arith.constant 0 : i32
    %c0_i32_1 = arith.constant 0 : i32
    return %c0_i32, %c0_i32_0 : i32, i32
  }
  func.func @transform_9(%arg0: i32) -> (i32, i32) {
    %c0_i32 = arith.constant 0 : i32
    %c0_i32_0 = arith.constant 0 : i32
    return %c0_i32, %arg0 : i32, i32
  }
}

</mosaic_0001>

<bundles_post_ra>
// kernel: tpu_custom_call.1
= control target key start
LH: loop header
LB: loop body
LE: loop exit
PB: predicated region body
PF: predicated region fallthrough
CT: control target
= control target key end

     0   :  { %14 = vsyncpa [#allocation4], 0  ;;  %s1574_s0 = inlined_call_operand.vmem [shape: f32[64,256], index: 0, kind: input, shape index: {}]   ;;  %s1575_s1 = inlined_call_operand.vmem [shape: f32[32,64], index: 1, kind: input, shape index: {}]   ;;  %s1576_s2 = inlined_call_operand.vmem [shape: f32[32,1], index: 2, kind: input, shape index: {}]   ;;  %s1577_s3 = inlined_call_operand.vmem [shape: f32[16,32], index: 3, kind: input, shape index: {}]   ;;  %s1578_s4 = inlined_call_operand.vmem [shape: f32[16,1], index: 4, kind: input, shape index: {}]   ;;  %s1579_s5 = inlined_call_operand.vmem [shape: f32[32,16], index: 5, kind: input, shape index: {}]   ;;  %s1580_s6 = inlined_call_operand.vmem [shape: f32[32,1], index: 6, kind: input, shape index: {}]   ;;  %s1581_s7 = inlined_call_operand.vmem [shape: f32[64,32], index: 7, kind: input, shape index: {}]   ;;  %s1582_s8 = inlined_call_operand.vmem [shape: f32[64,1], index: 8, kind: input, shape index: {}]   ;;  %s1583_s9 = inlined_call_operand.hbm [shape: f32[64,256], index: 9, kind: output, shape index: {}]  }
   0x1   :  { %16 = vsyncpa [#allocation4 + $0x1], 0  ;;  %s1323_s30 = smov 0   ;;  %s1325_s10 = smov 0  }
   0x2   :  { %s1327_s11 = smov 0   ;;  %s1329_s12 = smov 0  }
   0x3 LB: > { %s1031_s13 = sadd.s32 4294967295, %s1266_s12   ;;  %s1032_s14 = sadd.s32 4294967294, %s1266_s12   ;;  %s1266_s12 = sphi %s1329_s12, %s1589_s12   ;;  %s1262_s11 = sphi %s1327_s11, %s1588_s11   ;;  %s1258_s10 = sphi %s1325_s10, %s1587_s10   ;;  %s1254_s30 = sphi %s1323_s30, %s1586_s30  }
   0x4   : > { %s1346_s15 = sadd.s32 1, %s1266_s12   ;;  %s29_s16 = sadd.s32 1, %s1262_s11 }
   0x5   : > { %s26_s17 = ssub.s32 %s1266_s12, %s1346_s15  ;;  %p36_p0 = scmp.ne.s32.totalorder %s1262_s11, %s1258_s10 }
   0x6   : > { %p27_p1 = scmp.eq.s32.totalorder %s26_s17, 0  ;;  %p37_p2 = scmp.eq.s32.totalorder %s1266_s12, 0 }
   0x7   : > { %p234_p3 = scmp.eq.s32.totalorder %s1031_s13, 1  ;;  %p239_p4 = scmp.ne.s32.totalorder %s1258_s10, %s1254_s30 }
   0x8   : > { %s1359_s18 = scalar_select %p27_p1, %s1262_s11, %s29_s16  }
   0x9   : > { %p38_p5 = por %p37_p2, %p36_p0  ;;  %p1361_p6 = por %p234_p3, %p36_p0 }
   0xa   : > { %p240_p7 = scmp.eq.s32.totalorder %s1032_s14, 1  ;;  %p1034_p9 = scmp.ge.s32.totalorder %s1266_s12, 2 }
   0xc   : > { %p1365_p8 = por %p240_p7, %p239_p4  ;;  %280 = sbr.rel (%p1034_p9) target bundleno = 25 (0x19), region = 48 }
  0x11   : > { %283 = sbr.rel (!%p38_p5) target bundleno = 25 (0x19), region = 52  ;;  %s285_s21 = sand.u32 (%p38_p5), 1, %s1262_s11  }
  0x12   : > { %s1036_s22 = sshll.u32 (%p38_p5), %s1266_s12, 3  ;;  %s1035_s23 = sshll.u32 (%p38_p5), %s285_s21, 6 }
  0x13   : > { %s289_s26 = scalar_lea.vmem (%p38_p5), %s1574_s0, %s1036_s22  ;;  %s287_s27 = scalar_lea.vmem (%p38_p5), [#allocation2], %s1035_s23 }
  0x14   : > { %v332_v0 = vld [vmem:[%s289_s26] sm:$0xff] (%p38_p5)  ;;  %v334_v1 = vld [vmem:[%s289_s26 + $0x10] sm:$0xff] (%p38_p5) }
  0x15   : > { %v336_v2 = vld [vmem:[%s289_s26 + $0x20] sm:$0xff] (%p38_p5)  ;;  %333 = vst [vmem:[%s287_s27] sm:$0xff] (%p38_p5), %v332_v0  ;;  %335 = vst [vmem:[%s287_s27 + $0x8] sm:$0xff] (%p38_p5), %v334_v1  ;;  %v338_v3 = vld [vmem:[%s289_s26 + $0x30] sm:$0xff] (%p38_p5) }
  0x16   : > { %337 = vst [vmem:[%s287_s27 + $0x10] sm:$0xff] %v336_v2  ;;  %v340_v4 = vld [vmem:[%s289_s26 + $0x40] sm:$0xff]  ;;  %v342_v5 = vld [vmem:[%s289_s26 + $0x50] sm:$0xff]  ;;  %339 = vst [vmem:[%s287_s27 + $0x18] sm:$0xff] %v338_v3 }
  0x17   : > { %341 = vst [vmem:[%s287_s27 + $0x20] sm:$0xff] %v340_v4  ;;  %343 = vst [vmem:[%s287_s27 + $0x28] sm:$0xff] %v342_v5  ;;  %v344_v6 = vld [vmem:[%s289_s26 + $0x60] sm:$0xff]  ;;  %v346_v7 = vld [vmem:[%s289_s26 + $0x70] sm:$0xff] }
  0x18   : > { %345 = vst [vmem:[%s287_s27 + $0x30] sm:$0xff] %v344_v6  ;;  %347 = vst [vmem:[%s287_s27 + $0x38] sm:$0xff] %v346_v7 }
  0x19 PF: > { %p1037_p10 = scmp.ge.s32.totalorder %s1266_s12, 1  ;;  %p352_p11 = scmp.lt.s32.totalorder %s1266_s12, 3 }
  0x1b   : > { %p353_p12 = pnand %p1037_p10, %p352_p11 }
  0x1c   : > { %s359_s28 = sand.u32 (!%p353_p12), 1, %s1258_s10   ;;  %s1269_s29 = smov (!%p353_p12), [#allocation3]  }
  0x1d   : > { %356 = sbr.rel (%p353_p12) target bundleno = 894 (0x37e), region = 90  ;;  %s1385_s16 = sshll.u32 (!%p353_p12), %s359_s28, 6 }
  0x1e   : > { %s1395_s24 = scalar_lea.vmem (!%p353_p12), [#allocation2], %s1385_s16  ;;  %s393_s22 = scalar_lea.vmem (!%p353_p12), [#allocation3], %s1385_s16 }
  0x1f   : > { %s964_s23 = sshll.u32 (!%p353_p12), %s393_s22, 4  ;;  %s1059_s16 = sshll.u32 (!%p353_p12), %s1031_s13, 7  ;;  %s1524_s23 = int_to_ptr.vmem [resolvable:$true] %s964_s23 }
  0x20   : > { %s1533_s13 = scalar_lea.sflag (!%p353_p12), [#allocation4], %s359_s28  ;;  %s1206_s27 = scalar_lea.vmem (!%p353_p12), %s1524_s23, 1024 }
  0x21   : > { %p1207_p13 = scmp.ne.s32.totalorder (!%p353_p12), %s1524_s23, %s1206_s27  ;;  %s1210_s14 = sshll.u32 (!%p353_p12), %s1269_s29, 4  ;;  %s1211_s14 = int_to_ptr.vmem [resolvable:$false] %s1210_s14 }
  0x22   : > { %v402_v8 = vld [vmem:[%s1575_s1] sm:$0xff]  ;;  %vm430_vm0 = vcmask 523264   ;;  %v1268_v9 = vmov 0   ;;  %v409_v10 = vld [vmem:[%s1576_s2 + $0x18] sm:$0xff]  ;;  %v407_v11 = vld [vmem:[%s1576_s2 + $0x8] sm:$0xff]  ;;  %vm546_vm1 = vcmask 261120   ;;  %p1213_p2 = scmp.lt.s32.totalorder %s1524_s23, %s1211_s14 }
  0x23   : > { %1114 = vmatprep.mubr.msk.f32.mxu0 %vm430_vm0, %v402_v8  ;;  %1204 = vset.pattern.permute.xlu0 %v1268_v9  ;;  %v401_v12 = vld [vmem:[%s1395_s24 + $0x38] sm:$0xff]  ;;  %v400_v13 = vld [vmem:[%s1395_s24 + $0x30] sm:$0xff]  ;;  %v406_v15 = vld [vmem:[%s1576_s2] sm:$0xff]  ;;  %vm656_vm2 = vcmask 130048   ;;  %p1208_p0 = pnand %p1207_p13, %p1361_p6  ;;  %s1212_s17 = scalar_lea.vmem %s1211_s14, 2048 }
  0x24   : > { %427 = vperm.xlu0 %1204, %v409_v10   ;;  %1205 = vset.pattern.permute.xlu1 %v1268_v9  ;;  %v408_v14 = vld [vmem:[%s1576_s2 + $0x10] sm:$0xff]  ;;  %v399_v16 = vld [vmem:[%s1395_s24 + $0x28] sm:$0xff]  ;;  %v398_v17 = vld [vmem:[%s1395_s24 + $0x20] sm:$0xff]  ;;  %p1214_p3 = scmp.lt.s32.totalorder %s1212_s17, %s1206_s27 }
  0x25   : > { %417 = vperm.xlu1 %1205, %v407_v11   ;;  %1098 = vmatprep.subr.mxu0 %v401_v12  ;;  %v535_v18 = vld [vmem:[%s1578_s4 + $0x8] sm:$0xff]  ;;  %v534_v19 = vld [vmem:[%s1578_s4] sm:$0xff]  ;;  %v397_v20 = vld [vmem:[%s1395_s24 + $0x18] sm:$0xff]  ;;  %p1209_p1 = pneg %p1208_p0 }
  0x26   : > { %1099 = vmatpush3.msra.mxu0 %v401_v12  ;;  %v396_v21 = vld [vmem:[%s1395_s24 + $0x10] sm:$0xff]  ;;  %v635_v22 = vld [vmem:[%s1580_s6 + $0x18] sm:$0xff]  ;;  %v395_v24 = vld [vmem:[%s1395_s24 + $0x8] sm:$0xff]  ;;  %p1215_p4 = por %p1214_p3, %p1213_p2 }
  0x27   : > { %1100 = vmatprep.subr.mxu0 %v400_v13  ;;  %v634_v23 = vld [vmem:[%s1580_s6 + $0x10] sm:$0xff]  ;;  %v394_v25 = vld [vmem:[%s1395_s24] sm:$0xff]  ;;  %v633_v26 = vld [vmem:[%s1580_s6 + $0x8] sm:$0xff]  ;;  %s1529_s24 = scalar_lea.hbm %s1583_s9, %s1059_s16 }
  0x28   : > { %422 = vperm.xlu0 %1204, %v408_v14   ;;  %1101 = vmatpush3.msra.mxu0 %v400_v13  ;;  %v632_v27 = vld [vmem:[%s1580_s6] sm:$0xff]  ;;  %v403_v28 = vld [vmem:[%s1575_s1 + $0x8] sm:$0xff]  ;;  %v404_v29 = vld [vmem:[%s1575_s1 + $0x10] sm:$0xff]  ;;  %p1216_p5 = pnand %p1215_p4, %p1209_p1 }
  0x29   : > { %412 = vperm.xlu1 %1205, %v406_v15   ;;  %1102 = vmatprep.subr.mxu0 %v399_v16  ;;  %v766_v30 = vld [vmem:[%s1582_s8] sm:$0xff]  ;;  %v767_v31 = vld [vmem:[%s1582_s8 + $0x8] sm:$0xff]  ;;  %v405_v32 = vld [vmem:[%s1575_s1 + $0x18] sm:$0xff] }
  0x2a   : > { %1103 = vmatpush3.msra.mxu0 %v399_v16  ;;  %v768_v33 = vld [vmem:[%s1582_s8 + $0x10] sm:$0xff]  ;;  %v769_v34 = vld [vmem:[%s1582_s8 + $0x18] sm:$0xff]  ;;  %v770_v35 = vld [vmem:[%s1582_s8 + $0x20] sm:$0xff] }
  0x2b   : > { %1104 = vmatprep.subr.mxu0 %v398_v17  ;;  %v771_v36 = vld [vmem:[%s1582_s8 + $0x28] sm:$0xff]  ;;  %v772_v37 = vld [vmem:[%s1582_s8 + $0x30] sm:$0xff]  ;;  %v773_v38 = vld [vmem:[%s1582_s8 + $0x38] sm:$0xff] }
  0x2c   : > { %543 = vperm.xlu0 %1204, %v535_v18   ;;  %1105 = vmatpush3.msra.mxu0 %v398_v17  ;;  %v532_v39 = vld [vmem:[%s1577_s3] sm:$0xff]  ;;  %v533_v56 = vld [vmem:[%s1577_s3 + $0x8] sm:$0xff]  ;;  %v630_v1 = vld [vmem:[%s1579_s5 + $0x10] sm:$0xff] }
  0x2d   : > { %538 = vperm.xlu1 %1205, %v534_v19   ;;  %1106 = vmatprep.subr.mxu0 %v397_v20  ;;  %v628_v57 = vld [vmem:[%s1579_s5] sm:$0xff]  ;;  %v629_v0 = vld [vmem:[%s1579_s5 + $0x8] sm:$0xff]  ;;  %v631_v2 = vld [vmem:[%s1579_s5 + $0x18] sm:$0xff] }
  0x2e   : > { %1107 = vmatpush3.msra.mxu0 %v397_v20  ;;  %1135 = vmatprep.mubr.msk.f32.mxu1 %vm656_vm2, %v628_v57  ;;  %v758_v3 = vld [vmem:[%s1581_s7] sm:$0xff]  ;;  %v759_v20 = vld [vmem:[%s1581_s7 + $0x8] sm:$0xff] }
  0x2f   : > { %1108 = vmatprep.subr.mxu0 %v396_v21 }
  0x30   : > { %653 = vperm.xlu0 %1204, %v635_v22   ;;  %1109 = vmatpush3.msra.mxu0 %v396_v21  ;;  %v760_v21 = vld [vmem:[%s1581_s7 + $0x10] sm:$0xff]  ;;  %v761_v22 = vld [vmem:[%s1581_s7 + $0x18] sm:$0xff] }
  0x31   : > { %648 = vperm.xlu1 %1205, %v634_v23   ;;  %1110 = vmatprep.subr.mxu0 %v395_v24  ;;  %v762_v23 = vld [vmem:[%s1581_s7 + $0x20] sm:$0xff] }
  0x32   : > { %1111 = vmatpush3.msra.mxu0 %v395_v24  ;;  %v763_v24 = vld [vmem:[%s1581_s7 + $0x28] sm:$0xff] }
  0x33   : > { %1112 = vmatprep.subr.mxu0 %v394_v25 }
  0x34   : > { %643 = vperm.xlu0 %1204, %v633_v26   ;;  %1113 = vmatpush3.msra.mxu0 %v394_v25  ;;  %v764_v25 = vld [vmem:[%s1581_s7 + $0x30] sm:$0xff]  ;;  %v765_v26 = vld [vmem:[%s1581_s7 + $0x38] sm:$0xff] }
  0x35   : > { %638 = vperm.xlu1 %1205, %v632_v27   ;;  %1115 = vmatmul.mubr.msk.f32.vlgmr.msra.gmra.mxu0 %vm430_vm0, %v403_v28 }
  0x36   : > { %1117 = vmatprep.mubr.msk.f32.mxu0 %vm430_vm0, %v404_v29 }
  0x38   : > { %776 = vperm.xlu0 %1204, %v766_v30  }
  0x39   : > { %781 = vperm.xlu1 %1205, %v767_v31   ;;  %1118 = vmatmul.mubr.msk.f32.gmra.mxu0 %vm430_vm0, %v405_v32 }
  0x3a   : > { %1128 = vmatprep.mubr.msk.f32.mxu0 %vm546_vm1, %v532_v39 }
  0x3c   : > { %786 = vperm.xlu0 %1204, %v768_v33  }
  0x3d   : > { %791 = vperm.xlu1 %1205, %v769_v34  }
  0x40   : > { %796 = vperm.xlu0 %1204, %v770_v35  }
  0x41   : > { %801 = vperm.xlu1 %1205, %v771_v36  }
  0x44   : > { %806 = vperm.xlu0 %1204, %v772_v37  }
  0x45   : > { %811 = vperm.xlu1 %1205, %v773_v38  }
  0x9f   : > { %v428_v40 = vpop.permute.xlu0 %427 }
  0xa0   : > { %v418_v42 = vpop.permute.xlu1 %417 }
  0xa3   : > { %v423_v46 = vpop.permute.xlu0 %422 }
  0xa4   : > { %v413_v51 = vpop.permute.xlu1 %412 }
  0xa7   : > { %v544_v58 = vpop.permute.xlu0 %543 }
  0xa8   : > { %v539_v61 = vpop.permute.xlu1 %538 }
  0xab   : > { %v654_v4 = vpop.permute.xlu0 %653 }
  0xac   : > { %v649_v6 = vpop.permute.xlu1 %648 }
  0xaf   : > { %v644_v10 = vpop.permute.xlu0 %643 }
  0xb0   : > { %v639_v15 = vpop.permute.xlu1 %638 }
  0xb3   : > { %v777_v28 = vpop.permute.xlu0 %776 }
  0xb4   : > { %v782_v27 = vpop.permute.xlu1 %781 }
  0xb7   : > { %v787_v32 = vpop.permute.xlu0 %786 }
  0xb8   : > { %v792_v29 = vpop.permute.xlu1 %791 }
  0xbc   : > { %v802_v37 = vpop.permute.xlu1 %801 }
  0xf5   : > { %v1116_v41 = vpop.f32.mrf.mxu0 }
  0xf6   : > { %v515_v48 = vadd.f32 %v1116_v41, %v418_v42 }
  0xf7   : > { %v509_v43 = vpop.f32.mrf.mxu0 }
  0xf8   : > { %v510_v52 = vadd.f32 %v509_v43, %v413_v51  ;;  %v529_v54 = vmax.f32 %v515_v48, 0.0 }
  0xf9   : > { %v1119_v44 = vpop.f32.mrf.mxu0 }
  0xfa   : > { %v525_v45 = vadd.f32 %v1119_v44, %v428_v40  ;;  %v528_v55 = vmax.f32 %v510_v52, 0.0  ;;  %v797_v40 = vpop.permute.xlu0 %796 }
  0xfb   : > { %v519_v47 = vpop.f32.mrf.mxu0 }
  0xfc   : > { %v531_v49 = vmax.f32 %v525_v45, 0.0  ;;  %v520_v50 = vadd.f32 %v519_v47, %v423_v46  ;;  %v812_v45 = vpop.permute.xlu1 %811 }
  0xfe   : > { %v530_v53 = vmax.f32 %v520_v50, 0.0  ;;  %1120 = vmatprep.subr.mxu0 %v531_v49  ;;  %v807_v48 = vpop.permute.xlu0 %806 }
  0xff   : > { %1121 = vmatpush3.msra.mxu0 %v531_v49 }
 0x100   : > { %1122 = vmatprep.subr.mxu0 %v530_v53 }
 0x101   : > { %1123 = vmatpush3.msra.mxu0 %v530_v53 }
 0x102   : > { %1124 = vmatprep.subr.mxu0 %v529_v54 }
 0x103   : > { %1125 = vmatpush3.msra.mxu0 %v529_v54 }
 0x104   : > { %1126 = vmatprep.subr.mxu0 %v528_v55 }
 0x105   : > { %1127 = vmatpush3.msra.mxu0 %v528_v55 }
 0x106   : > { %1129 = vmatmul.mubr.msk.f32.vlgmr.msra.gmra.mxu0 %vm546_vm1, %v533_v56 }
 0x1c6   : > { %v1130_v59 = vpop.f32.mrf.mxu0 }
 0x1c7   : > { %v625_v60 = vadd.f32 %v1130_v59, %v544_v58 }
 0x1c8   : > { %v619_v62 = vpop.f32.mrf.mxu0 }
 0x1c9   : > { %v620_v63 = vadd.f32 %v619_v62, %v539_v61  ;;  %1131 = vmatprep.subr.mxu1 %v625_v60 }
 0x1ca   : > { %1132 = vmatpush3.msra.mxu1 %v625_v60 }
 0x1cb   : > { %1133 = vmatprep.subr.mxu1 %v620_v63 }
 0x1cc   : > { %1134 = vmatpush3.msra.mxu1 %v620_v63 }
 0x1cd   : > { %1136 = vmatmul.mubr.msk.f32.vlgmr.msra.gmra.mxu1 %vm656_vm2, %v629_v0 }
 0x1ce   : > { %1138 = vmatprep.mubr.msk.f32.mxu1 %vm656_vm2, %v630_v1 }
 0x1d1   : > { %1139 = vmatmul.mubr.msk.f32.gmra.mxu1 %vm656_vm2, %v631_v2 }
 0x1d2   : > { %1149 = vmatprep.mubr.msk.f32.mxu1 %vm546_vm1, %v758_v3 }
 0x28d   : > { %v1137_v5 = vpop.f32.mrf.mxu1 }
 0x28e   : > { %v741_v12 = vadd.f32 %v1137_v5, %v644_v10 }
 0x28f   : > { %v735_v7 = vpop.f32.mrf.mxu1 }
 0x290   : > { %v736_v16 = vadd.f32 %v735_v7, %v639_v15  ;;  %v755_v18 = vmax.f32 %v741_v12, 0.0 }
 0x291   : > { %v1140_v8 = vpop.f32.mrf.mxu1 }
 0x292   : > { %v751_v9 = vadd.f32 %v1140_v8, %v654_v4  ;;  %v754_v19 = vmax.f32 %v736_v16, 0.0 }
 0x293   : > { %v745_v11 = vpop.f32.mrf.mxu1 }
 0x294   : > { %v757_v13 = vmax.f32 %v751_v9, 0.0  ;;  %v746_v14 = vadd.f32 %v745_v11, %v649_v6 }
 0x296   : > { %v756_v17 = vmax.f32 %v746_v14, 0.0  ;;  %1141 = vmatprep.subr.mxu1 %v757_v13 }
 0x297   : > { %1142 = vmatpush3.msra.mxu1 %v757_v13 }
 0x298   : > { %1143 = vmatprep.subr.mxu1 %v756_v17 }
 0x299   : > { %1144 = vmatpush3.msra.mxu1 %v756_v17 }
 0x29a   : > { %1145 = vmatprep.subr.mxu1 %v755_v18 }
 0x29b   : > { %1146 = vmatpush3.msra.mxu1 %v755_v18 }
 0x29c   : > { %1147 = vmatprep.subr.mxu1 %v754_v19 }
 0x29d   : > { %1148 = vmatpush3.msra.mxu1 %v754_v19 }
 0x29e   : > { %1150 = vmatmul.mubr.msk.f32.vlgmr.msra.gmra.mxu1 %vm546_vm1, %v759_v20 }
 0x29f   : > { %1152 = vmatprep.mubr.msk.f32.mxu1 %vm546_vm1, %v760_v21 }
 0x2a2   : > { %1153 = vmatmul.mubr.msk.f32.gmra.mxu1 %vm546_vm1, %v761_v22 }
 0x2a3   : > { %1155 = vmatprep.mubr.msk.f32.mxu1 %vm546_vm1, %v762_v23 }
 0x2a6   : > { %1156 = vmatmul.mubr.msk.f32.gmra.mxu1 %vm546_vm1, %v763_v24 }
 0x2a7   : > { %1158 = vmatprep.mubr.msk.f32.mxu1 %vm546_vm1, %v764_v25 }
 0x2aa   : > { %1159 = vmatmul.mubr.msk.f32.gmra.mxu1 %vm546_vm1, %v765_v26 }
 0x35e   : > { %v1151_v30 = vpop.f32.mrf.mxu1 }
 0x35f   : > { %v910_v31 = vadd.f32 %v1151_v30, %v782_v27 }
 0x360   : > { %v904_v33 = vpop.f32.mrf.mxu1 }
 0x361   : > { %944 = vst [vmem:[%s393_s22 + $0x8] sm:$0xff] %v910_v31  ;;  %v905_v34 = vadd.f32 %v904_v33, %v777_v28 }
 0x362   : > { %v1154_v35 = vpop.f32.mrf.mxu1 }
 0x363   : > { %943 = vst [vmem:[%s393_s22] sm:$0xff] %v905_v34  ;;  %v920_v36 = vadd.f32 %v1154_v35, %v792_v29 }
 0x364   : > { %v914_v38 = vpop.f32.mrf.mxu1 }
 0x365   : > { %946 = vst [vmem:[%s393_s22 + $0x18] sm:$0xff] %v920_v36  ;;  %v915_v39 = vadd.f32 %v914_v38, %v787_v32 }
 0x366   : > { %v1157_v41 = vpop.f32.mrf.mxu1 }
 0x367   : > { %945 = vst [vmem:[%s393_s22 + $0x10] sm:$0xff] %v915_v39  ;;  %v930_v42 = vadd.f32 %v1157_v41, %v802_v37 }
 0x368   : > { %v924_v43 = vpop.f32.mrf.mxu1 }
 0x369   : > { %948 = vst [vmem:[%s393_s22 + $0x28] sm:$0xff] %v930_v42  ;;  %v925_v44 = vadd.f32 %v924_v43, %v797_v40 }
 0x36a   : > { %v1160_v46 = vpop.f32.mrf.mxu1 }
 0x36b   : > { %947 = vst [vmem:[%s393_s22 + $0x20] sm:$0xff] %v925_v44  ;;  %v940_v47 = vadd.f32 %v1160_v46, %v812_v45 }
 0x36c   : > { %v934_v49 = vpop.f32.mrf.mxu1 }
 0x36d   : > { %950 = vst [vmem:[%s393_s22 + $0x38] sm:$0xff] %v940_v47  ;;  %v935_v50 = vadd.f32 %v934_v49, %v807_v48 }
 0x36f   : > { %949 = vst [vmem:[%s393_s22 + $0x30] sm:$0xff] %v935_v50 }
 0x370   : > { %1219 = shalt.err (!%p1216_p5)
}
 0x371   : > { %s1220_s28 = scalar_lea.hbm %s1529_s24, 1024  ;;  %s1224_s16 = scalar_lea.hbm %s1583_s9, 2048 }
 0x372   : > { %p1221_p7 = scmp.ne.s32.totalorder %s1529_s24, %s1220_s28  ;;  %p1225_p12 = scmp.lt.s32.totalorder %s1529_s24, %s1583_s9 }
 0x373   : > { %p1226_p13 = scmp.lt.s32.totalorder %s1224_s16, %s1220_s28 }
 0x374   : > { %p1222_p10 = pnand %p1221_p7, %p1361_p6 }
 0x375   : > { %p1227_p0 = por %p1226_p13, %p1225_p12 }
 0x376   : > { %p1223_p11 = pneg %p1222_p10 }
 0x378   : > { %p1228_p1 = pnand %p1227_p0, %p1223_p11 }
 0x37a   : > { %1231 = shalt.err (!%p1228_p1)
}
 0x37b   : > { %s1270_s27 = smov 128   ;;  %s1271_s29 = smov 256  }
 0x37c   : > { %s1272_s14 = smov 8  }
 0x37d   : > { %1161 = dma.vmem_to_hbm [thread:$0]  (%p1361_p6), %s1524_s23, 1024, %s1529_s24, %s1533_s13, %s1270_s27, %s1271_s29, %s1272_s14  }
 0x37e PF: > { %s979_s17 = sand.u32 1, %s1254_s30   ;;  %p1164_p2 = pnand %p1034_p9, %p1365_p8 }
 0x37f   : > { %s980_s28 = scalar_lea.sflag [#allocation4], %s979_s17 }
 0x380   : > { %p1165_p3 = pneg %p1164_p2 }
 0x382   : > { %1249 = dma.done.wait (%p1165_p3), %s980_s28, 1024  }
 0x383   : > { %1251 = vsyncadd (%p1165_p3), %s980_s28, 4294966272  ;;  %p19_p4 = scmp.ge.s32.totalorder %s1346_s15, 4   ;;  %s1586_s30 = smov %s1258_s10 }
 0x384   : > { %s1587_s10 = smov %s1262_s11  ;;  %s1588_s11 = smov %s1359_s18 }
 0x385   : > { %s1589_s12 = smov %s1346_s15  ;;  %21 = sbr.rel (!%p19_p4) target bundleno = 3 (0x3), region = 134 }
 0x38a   :  { %985 = vsyncpa [#allocation4], 1 }
 0x38b   :  { %987 = vsyncpa [#allocation4 + $0x1], 1 }

</bundles_post_ra>
